<compile_context>
chip_gen: v7x
topology: tpu7x:2x2x1
jax: 0.10.0
libtpu: 0.0.40
codegen_flags: <defaults>
</compile_context>

<pallas_src>
import functools
import math

import jax
import jax.numpy as jnp
from jax import lax
from jax.experimental import pallas as pl
from jax.experimental.pallas import tpu as pltpu


# --------------------------------- kernel -----------------------------------
def _attention_head_kernel(*refs, scale, has_mask):
    if has_mask:
        (x_ref, enc_ref, bias_ref,
         wq_ref, bq_ref, wkv_ref, bkv_ref, out_ref) = refs
    else:
        (x_ref, enc_ref,
         wq_ref, bq_ref, wkv_ref, bkv_ref, out_ref) = refs

    x = x_ref[0]      # (Sq, E)  bf16
    enc = enc_ref[0]  # (Sk, E)  bf16
    hdp = wq_ref.shape[1]

    # Projections: bf16 x bf16 -> f32 accumulate (native MXU path).
    q = jnp.dot(x, wq_ref[...], preferred_element_type=jnp.float32) + bq_ref[...]
    kv = jnp.dot(enc, wkv_ref[...], preferred_element_type=jnp.float32) + bkv_ref[...]
    k = kv[:, :hdp]          # lane-aligned slices (hdp % 128 == 0) -> no repack
    v = kv[:, hdp:]

    # Scores: fold the 1/sqrt(head_dim) scale into Q, run the MXU in bf16,
    # accumulate f32.  scale uses the TRUE (unpadded) head_dim.
    qs = (q * scale).astype(jnp.bfloat16)
    s = lax.dot_general(qs, k.astype(jnp.bfloat16), (((1,), (1,)), ((), ())),
                        preferred_element_type=jnp.float32)
    if has_mask:
        s = s + bias_ref[0].astype(jnp.float32)   # additive bias: 0 or -1e30

    # Softmax in f32.
    m = jnp.max(s, axis=-1, keepdims=True)
    p = jnp.exp(s - m)
    inv_denom = pl.reciprocal(jnp.sum(p, axis=-1, keepdims=True), approx=True)
    a = (p * inv_denom).astype(jnp.bfloat16)

    out_ref[0] = jnp.dot(a, v.astype(jnp.bfloat16),
                         preferred_element_type=jnp.float32).astype(out_ref.dtype)


# ------------------------------ python wrapper -------------------------------
def enc_dec_attention_head(hidden_state, encode_hidden_state, params, mask=None):
    """hidden_state: (B, Sq, E); encode_hidden_state: (B, Sk, E);
    params = (wq, bq, wk, bk, wv, bv) with w: (E, HD), b: (HD,);
    mask: None or broadcastable-to (B, Sq, Sk) (nonzero = keep)."""
    wq, bq, wk, bk, wv, bv = params
    B, SQ, E = hidden_state.shape
    _, SK, _ = encode_hidden_state.shape
    HD = wq.shape[1]
    HDP = pl.cdiv(HD, 128) * 128              # lane-aligned padded head dim
    out_dtype = hidden_state.dtype

    def pad_w(w):   # (E, HD) -> (E, HDP) bf16
        return jnp.pad(w, ((0, 0), (0, HDP - HD))).astype(jnp.bfloat16)

    def pad_b(b):   # (HD,) -> (1, HDP) f32
        return jnp.pad(b, (0, HDP - HD)).reshape(1, HDP).astype(jnp.float32)

    wq_p, bq_p = pad_w(wq), pad_b(bq)
    wkv_p = jnp.concatenate([pad_w(wk), pad_w(wv)], axis=1)    # (E, 2*HDP) bf16
    bkv_p = jnp.concatenate([pad_b(bk), pad_b(bv)], axis=1)    # (1, 2*HDP) f32
    weight_args = (wq_p, bq_p, wkv_p, bkv_p)

    x_bf = hidden_state.astype(jnp.bfloat16)
    enc_bf = encode_hidden_state.astype(jnp.bfloat16)

    has_mask = mask is not None
    inputs = [x_bf, enc_bf]
    in_specs = [pl.BlockSpec((1, SQ, E), lambda b: (b, 0, 0)),
                pl.BlockSpec((1, SK, E), lambda b: (b, 0, 0))]
    if has_mask:
        mask_b = jnp.broadcast_to(mask, (B, SQ, SK))
        bias = jnp.where(mask_b == 0, jnp.float32(-1e30), jnp.float32(0.0))
        inputs.append(bias.astype(jnp.bfloat16))
        in_specs.append(pl.BlockSpec((1, SQ, SK), lambda b: (b, 0, 0)))

    # Weight/bias specs: constant block index across the batch grid.
    for w_or_b in weight_args:
        inputs.append(w_or_b)
        r = w_or_b.ndim
        in_specs.append(pl.BlockSpec(w_or_b.shape, lambda b, _r=r: (0,) * _r))

    kernel = functools.partial(_attention_head_kernel,
                               scale=1.0 / math.sqrt(HD),
                               has_mask=has_mask)

    flops = 2 * B * (SQ * E * HDP + 2 * SK * E * HDP + 2 * SQ * SK * HDP)
    bytes_accessed = (hidden_state.size + encode_hidden_state.size) * 2 \
        + (B * SQ * SK * 2 if has_mask else 0) \
        + 3 * E * HDP * 2 + 3 * HDP * 4 \
        + B * SQ * HDP * 4
    cost = pl.CostEstimate(flops=flops, transcendentals=B * SQ * SK,
                           bytes_accessed=bytes_accessed)

    out_padded = pl.pallas_call(
        kernel,
        out_shape=jax.ShapeDtypeStruct((B, SQ, HDP), out_dtype),
        grid=(B,),
        in_specs=in_specs,
        out_specs=pl.BlockSpec((1, SQ, HDP), lambda b: (b, 0, 0)),
        compiler_params=pltpu.CompilerParams(
            dimension_semantics=("parallel",),          # megacore on v7x
            vmem_limit_bytes=32 * 1024 * 1024),         # fits v5e/v6e/v7x
        cost_estimate=cost,
    )(*inputs)

    return out_padded if HDP == HD else out_padded[..., :HD]


# ------------------------- deterministic parameter init ----------------------
def init_params(key, emb_dim, head_dim):
    """PyTorch nn.Linear-style init, stored as (in, out) for JAX matmuls."""
    ks = jax.random.split(key, 6)
    bound = 1.0 / math.sqrt(emb_dim)

    def u(k, shape):
        return jax.random.uniform(k, shape, jnp.float32, -bound, bound)

    wq, bq = u(ks[0], (emb_dim, head_dim)), u(ks[1], (head_dim,))
    wk, bk = u(ks[2], (emb_dim, head_dim)), u(ks[3], (head_dim,))
    wv, bv = u(ks[4], (emb_dim, head_dim)), u(ks[5], (head_dim,))
    return (wq, bq, wk, bk, wv, bv)


# ------------------------------ pure-JAX reference ---------------------------
def reference(hidden_state, encode_hidden_state, params, mask=None):
    wq, bq, wk, bk, wv, bv = params
    q = hidden_state @ wq + bq
    k = encode_hidden_state @ wk + bk
    v = encode_hidden_state @ wv + bv
    a = q @ jnp.swapaxes(k, -1, -2) / math.sqrt(k.shape[-1])
    if mask is not None:
        a = jnp.where(mask == 0, -jnp.inf, a)
    a = jax.nn.softmax(a, axis=-1)
    return a @ v


# ----------------------------------- main ------------------------------------
if __name__ == "__main__":
    B, SQ, SK = 2, 8, 16          # decoder seq, encoder seq
    EMB, HEAD = 32, 64            # emb_dim, head_dim

    root = jax.random.PRNGKey(0)
    kx, ke, kp = jax.random.split(root, 3)
    hidden_state = jax.random.normal(kx, (B, SQ, EMB), jnp.float32)
    encode_hidden_state = jax.random.normal(ke, (B, SK, EMB), jnp.float32)
    params = init_params(kp, EMB, HEAD)

    # Encoder padding mask: batch 0 sees all 16 positions, batch 1 only 10.
    valid_len = jnp.array([SK, 10], jnp.int32)
    mask = (jnp.arange(SK)[None, None, :] < valid_len[:, None, None])
    mask = jnp.broadcast_to(mask, (B, SQ, SK)).astype(jnp.float32)

    # masked path
    out_m = jax.block_until_ready(
        enc_dec_attention_head(hidden_state, encode_hidden_state, params, mask))
    # unmasked path (mask=None)
    out_n = jax.block_until_ready(
        enc_dec_attention_head(hidden_state, encode_hidden_state, params, None))

    ref_m = reference(hidden_state, encode_hidden_state, params, mask)
    ref_n = reference(hidden_state, encode_hidden_state, params, None)

    err_m = float(jnp.max(jnp.abs(out_m - ref_m)))
    err_n = float(jnp.max(jnp.abs(out_n - ref_n)))

    assert out_m.shape == (B, SQ, HEAD) and out_m.dtype == jnp.float32
    assert out_n.shape == (B, SQ, HEAD)
    assert err_m < 2e-2, f"masked mismatch vs reference: {err_m}"
    assert err_n < 2e-2, f"unmasked mismatch vs reference: {err_n}"
    print("KERNEL_OK")
</pallas_src>

<mosaic_0001>
module attributes {stable_mosaic.version = 11 : i64} {
  func.func @_attention_head_kernel(%arg0: i32, %arg1: memref<1x8x32xbf16, #tpu.memory_space<vmem>>, %arg2: memref<1x16x32xbf16, #tpu.memory_space<vmem>>, %arg3: memref<1x8x16xbf16, #tpu.memory_space<vmem>>, %arg4: memref<32x128xbf16, #tpu.memory_space<vmem>>, %arg5: memref<1x128xf32, #tpu.memory_space<vmem>>, %arg6: memref<32x256xbf16, #tpu.memory_space<vmem>>, %arg7: memref<1x256xf32, #tpu.memory_space<vmem>>, %arg8: memref<1x8x128xf32, #tpu.memory_space<vmem>>) attributes {dimension_semantics = [#tpu.dimension_semantics<parallel>], iteration_bounds = array<i64: 2>, scalar_prefetch = 0 : i64, scratch_operands = 0 : i64, tpu.core_type = #tpu.core_type<tc>, window_params = [{transform_indices = @transform_0, window_bounds = array<i64: 1, 8, 32>}, {transform_indices = @transform_1, window_bounds = array<i64: 1, 16, 32>}, {transform_indices = @transform_2, window_bounds = array<i64: 1, 8, 16>}, {pipeline_mode = #tpu.pipeline_mode<synchronous>, transform_indices = @transform_3, window_bounds = array<i64: 32, 128>}, {pipeline_mode = #tpu.pipeline_mode<synchronous>, transform_indices = @transform_4, window_bounds = array<i64: 1, 128>}, {pipeline_mode = #tpu.pipeline_mode<synchronous>, transform_indices = @transform_5, window_bounds = array<i64: 32, 256>}, {pipeline_mode = #tpu.pipeline_mode<synchronous>, transform_indices = @transform_6, window_bounds = array<i64: 1, 256>}, {transform_indices = @transform_7, window_bounds = array<i64: 1, 8, 128>}]} {
    %c0 = arith.constant 0 : index
    %c0_0 = arith.constant 0 : index
    %c0_1 = arith.constant 0 : index
    %0 = vector.load %arg1[%c0, %c0_0, %c0_1] : memref<1x8x32xbf16, #tpu.memory_space<vmem>>, vector<1x8x32xbf16>
    %1 = vector.shape_cast %0 : vector<1x8x32xbf16> to vector<8x32xbf16>
    %c0_2 = arith.constant 0 : index
    %c0_3 = arith.constant 0 : index
    %c0_4 = arith.constant 0 : index
    %2 = vector.load %arg2[%c0_2, %c0_3, %c0_4] : memref<1x16x32xbf16, #tpu.memory_space<vmem>>, vector<1x16x32xbf16>
    %3 = vector.shape_cast %2 : vector<1x16x32xbf16> to vector<16x32xbf16>
    %c0_5 = arith.constant 0 : index
    %c0_6 = arith.constant 0 : index
    %4 = vector.load %arg4[%c0_5, %c0_6] : memref<32x128xbf16, #tpu.memory_space<vmem>>, vector<32x128xbf16>
    %cst = arith.constant dense<0.000000e+00> : vector<8x128xf32>
    %5 = tpu.matmul %1, %4, %cst {dimension_numbers = #tpu.dot_dimension_numbers<[1], [0], [0], [1], [0, 0, 1, 1], [], []>} : vector<8x32xbf16>, vector<32x128xbf16>, vector<8x128xf32> -> vector<8x128xf32>
    %c0_7 = arith.constant 0 : index
    %c0_8 = arith.constant 0 : index
    %6 = vector.load %arg5[%c0_7, %c0_8] : memref<1x128xf32, #tpu.memory_space<vmem>>, vector<1x128xf32>
    %7 = vector.broadcast %6 : vector<1x128xf32> to vector<8x128xf32>
    %8 = arith.addf %5, %7 : vector<8x128xf32>
    %c0_9 = arith.constant 0 : index
    %c0_10 = arith.constant 0 : index
    %9 = vector.load %arg6[%c0_9, %c0_10] : memref<32x256xbf16, #tpu.memory_space<vmem>>, vector<32x256xbf16>
    %cst_11 = arith.constant dense<0.000000e+00> : vector<16x256xf32>
    %10 = tpu.matmul %3, %9, %cst_11 {dimension_numbers = #tpu.dot_dimension_numbers<[1], [0], [0], [1], [0, 0, 1, 1], [], []>} : vector<16x32xbf16>, vector<32x256xbf16>, vector<16x256xf32> -> vector<16x256xf32>
    %c0_12 = arith.constant 0 : index
    %c0_13 = arith.constant 0 : index
    %11 = vector.load %arg7[%c0_12, %c0_13] : memref<1x256xf32, #tpu.memory_space<vmem>>, vector<1x256xf32>
    %12 = vector.broadcast %11 : vector<1x256xf32> to vector<16x256xf32>
    %13 = arith.addf %10, %12 : vector<16x256xf32>
    %14 = vector.extract_strided_slice %13 {offsets = [0, 0], sizes = [16, 128], strides = [1, 1]} : vector<16x256xf32> to vector<16x128xf32>
    %15 = vector.extract_strided_slice %13 {offsets = [0, 128], sizes = [16, 128], strides = [1, 1]} : vector<16x256xf32> to vector<16x128xf32>
    %cst_14 = arith.constant 1.250000e-01 : f32
    %16 = vector.broadcast %cst_14 : f32 to vector<8x128xf32>
    %17 = arith.mulf %8, %16 : vector<8x128xf32>
    %18 = arith.truncf %17 : vector<8x128xf32> to vector<8x128xbf16>
    %19 = arith.truncf %14 : vector<16x128xf32> to vector<16x128xbf16>
    %cst_15 = arith.constant dense<0.000000e+00> : vector<8x16xf32>
    %20 = tpu.matmul %18, %19, %cst_15 {dimension_numbers = #tpu.dot_dimension_numbers<[1], [1], [0], [0], [0, 0, 1, 0], [], []>} : vector<8x128xbf16>, vector<16x128xbf16>, vector<8x16xf32> -> vector<8x16xf32>
    %c0_16 = arith.constant 0 : index
    %c0_17 = arith.constant 0 : index
    %c0_18 = arith.constant 0 : index
    %21 = vector.load %arg3[%c0_16, %c0_17, %c0_18] : memref<1x8x16xbf16, #tpu.memory_space<vmem>>, vector<1x8x16xbf16>
    %22 = vector.shape_cast %21 : vector<1x8x16xbf16> to vector<8x16xbf16>
    %23 = arith.extf %22 : vector<8x16xbf16> to vector<8x16xf32>
    %24 = arith.addf %20, %23 : vector<8x16xf32>
    %cst_19 = arith.constant dense<0xFF800000> : vector<8xf32>
    %25 = vector.multi_reduction <maximumf>, %24, %cst_19 [1] : vector<8x16xf32> to vector<8xf32>
    %26 = vector.shape_cast %25 : vector<8xf32> to vector<8x1xf32>
    %27 = vector.broadcast %26 : vector<8x1xf32> to vector<8x16xf32>
    %28 = arith.subf %24, %27 : vector<8x16xf32>
    %29 = math.exp %28 : vector<8x16xf32>
    %cst_20 = arith.constant dense<0.000000e+00> : vector<8xf32>
    %30 = vector.multi_reduction <add>, %29, %cst_20 [1] : vector<8x16xf32> to vector<8xf32>
    %31 = vector.shape_cast %30 : vector<8xf32> to vector<8x1xf32>
    %32 = tpu.reciprocal %31 {approx = true} : vector<8x1xf32> -> vector<8x1xf32>
    %33 = vector.broadcast %32 : vector<8x1xf32> to vector<8x16xf32>
    %34 = arith.mulf %29, %33 : vector<8x16xf32>
    %35 = arith.truncf %34 : vector<8x16xf32> to vector<8x16xbf16>
    %36 = arith.truncf %15 : vector<16x128xf32> to vector<16x128xbf16>
    %cst_21 = arith.constant dense<0.000000e+00> : vector<8x128xf32>
    %37 = tpu.matmul %35, %36, %cst_21 {dimension_numbers = #tpu.dot_dimension_numbers<[1], [0], [0], [1], [0, 0, 1, 1], [], []>} : vector<8x16xbf16>, vector<16x128xbf16>, vector<8x128xf32> -> vector<8x128xf32>
    %c0_22 = arith.constant 0 : index
    %c0_23 = arith.constant 0 : index
    %c0_24 = arith.constant 0 : index
    %38 = vector.load %arg8[%c0_22, %c0_23, %c0_24] : memref<1x8x128xf32, #tpu.memory_space<vmem>>, vector<1x8x128xf32>
    %39 = vector.shape_cast %38 : vector<1x8x128xf32> to vector<8x128xf32>
    %40 = vector.shape_cast %37 : vector<8x128xf32> to vector<1x8x128xf32>
    tpu.vector_store %arg8[%c0_22, %c0_23, %c0_24], %40 {strides = array<i32>} : memref<1x8x128xf32, #tpu.memory_space<vmem>>, vector<1x8x128xf32>,
    return
  }
  func.func @transform_0(%arg0: i32) -> (i32, i32, i32) {
    %c0_i32 = arith.constant 0 : i32
    %c0_i32_0 = arith.constant 0 : i32
    %c0_i32_1 = arith.constant 0 : i32
    return %arg0, %c0_i32, %c0_i32_0 : i32, i32, i32
  }
  func.func @transform_1(%arg0: i32) -> (i32, i32, i32) {
    %c0_i32 = arith.constant 0 : i32
    %c0_i32_0 = arith.constant 0 : i32
    %c0_i32_1 = arith.constant 0 : i32
    return %arg0, %c0_i32, %c0_i32_0 : i32, i32, i32
  }
  func.func @transform_2(%arg0: i32) -> (i32, i32, i32) {
    %c0_i32 = arith.constant 0 : i32
    %c0_i32_0 = arith.constant 0 : i32
    %c0_i32_1 = arith.constant 0 : i32
    return %arg0, %c0_i32, %c0_i32_0 : i32, i32, i32
  }
  func.func @transform_3(%arg0: i32) -> (i32, i32) {
    %c0_i32 = arith.constant 0 : i32
    %c0_i32_0 = arith.constant 0 : i32
    %c0_i32_1 = arith.constant 0 : i32
    return %c0_i32, %c0_i32_0 : i32, i32
  }
  func.func @transform_4(%arg0: i32) -> (i32, i32) {
    %c0_i32 = arith.constant 0 : i32
    %c0_i32_0 = arith.constant 0 : i32
    %c0_i32_1 = arith.constant 0 : i32
    return %c0_i32, %c0_i32_0 : i32, i32
  }
  func.func @transform_5(%arg0: i32) -> (i32, i32) {
    %c0_i32 = arith.constant 0 : i32
    %c0_i32_0 = arith.constant 0 : i32
    %c0_i32_1 = arith.constant 0 : i32
    return %c0_i32, %c0_i32_0 : i32, i32
  }
  func.func @transform_6(%arg0: i32) -> (i32, i32) {
    %c0_i32 = arith.constant 0 : i32
    %c0_i32_0 = arith.constant 0 : i32
    %c0_i32_1 = arith.constant 0 : i32
    return %c0_i32, %c0_i32_0 : i32, i32
  }
  func.func @transform_7(%arg0: i32) -> (i32, i32, i32) {
    %c0_i32 = arith.constant 0 : i32
    %c0_i32_0 = arith.constant 0 : i32
    %c0_i32_1 = arith.constant 0 : i32
    return %arg0, %c0_i32, %c0_i32_0 : i32, i32, i32
  }
}

</mosaic_0001>

<bundles_post_ra>
// kernel: tpu_custom_call.1
= control target key start
LH: loop header
LB: loop body
LE: loop exit
PB: predicated region body
PF: predicated region fallthrough
CT: control target
= control target key end

     0   :  { %s1558_s0 = inlined_call_operand.hbm [shape: bf16[2,8,32], index: 0, kind: input, shape index: {}]   ;;  %s1559_s1 = inlined_call_operand.hbm [shape: bf16[2,16,32], index: 1, kind: input, shape index: {}]   ;;  %s1560_s2 = inlined_call_operand.hbm [shape: bf16[2,8,16], index: 2, kind: input, shape index: {}]   ;;  %s1561_s3 = inlined_call_operand.hbm [shape: bf16[32,128], index: 3, kind: input, shape index: {}]   ;;  %s1562_s4 = inlined_call_operand.vmem [shape: f32[1,128], index: 4, kind: input, shape index: {}]   ;;  %s1563_s5 = inlined_call_operand.hbm [shape: bf16[32,256], index: 5, kind: input, shape index: {}]   ;;  %s1564_s6 = inlined_call_operand.vmem [shape: f32[1,256], index: 6, kind: input, shape index: {}]   ;;  %s1565_s7 = inlined_call_operand.hbm [shape: f32[2,8,128], index: 7, kind: output, shape index: {}]  }
   0x1   :  { %1582 = sst [smem:[#allocation20_spill]] %s1559_s1 }
   0x2   :  { %1583 = sst [smem:[#allocation21_spill]] %s1561_s3 }
   0x3   :  { %12 = vsyncpa [#allocation3], 0 }
   0x4   :  { %14 = vsyncpa [#allocation3 + $0x1], 0 }
   0x5   :  { %15 = vsyncpa [#allocation6], 0 }
   0x6   :  { %17 = vsyncpa [#allocation6 + $0x1], 0 }
   0x7   :  { %18 = vsyncpa [#allocation9], 0 }
   0x8   :  { %19 = vsyncpa [#allocation4], 0 }
   0x9   :  { %21 = vsyncpa [#allocation4 + $0x1], 0  ;;  %s1238_s24 = smov 0   ;;  %s1240_s25 = smov 0  }
   0xa   :  { %s1242_s26 = smov 0   ;;  %s1244_s27 = smov 0  }
   0xb LB: > { %1584 = sst [smem:[#allocation16_spill]] %s1179_s26  ;;  %s1259_s28 = sadd.s32 4294967295, %s1183_s27   ;;  %s1183_s27 = sphi %s1244_s27, %s1615_s27   ;;  %s1179_s26 = sphi %s1242_s26, %s1617_s26   ;;  %s1175_s25 = sphi %s1240_s25, %s1619_s25   ;;  %s1171_s24 = sphi %s1238_s24, %s1618_s24  }
   0xc   : > { %s804_s29 = sadd.s32 4294967294, %s1183_s27   ;;  %s1263_s30 = sadd.s32 1, %s1183_s27  }
   0xd   : > { %1585 = sst [smem:[#allocation17_spill]] %s1263_s30  ;;  %s34_s8 = sadd.s32 1, %s1179_s26 }
   0xe   : > { %s31_s9 = ssub.s32 %s1183_s27, %s1263_s30  ;;  %p41_p0 = scmp.ne.s32.totalorder %s1179_s26, %s1175_s25 }
   0xf   : > { %p32_p1 = scmp.eq.s32.totalorder %s31_s9, 0  ;;  %p42_p2 = scmp.eq.s32.totalorder %s1183_s27, 0 }
  0x10   : > { %p47_p3 = scmp.ne.s32.totalorder %s1175_s25, %s1171_s24  ;;  %p1566_p4 = scmp.eq.s32.totalorder %s1259_s28, 0 }
  0x11   : > { %s1275_s10 = scalar_select %p32_p1, %s1179_s26, %s34_s8  }
  0x12   : > { %p1277_p5 = por %p42_p2, %p41_p0  ;;  %p1283_p6 = por %p1566_p4, %p47_p3 }
  0x13   : > { %1586 = sst [smem:[#allocation18_spill]] %s1275_s10  ;;  %p207_p7 = scmp.eq.s32.totalorder %s1259_s28, 1 }
  0x14   : > { %s1587_s11 = scalar_select %p1277_p5, 1, 0 }
  0x15   : > { %s1588_s12 = scalar_select %p1283_p6, 1, 0 }
  0x16   : > { %p213_p8 = scmp.eq.s32.totalorder %s804_s29, 1  ;;  %p805_p9 = scmp.ge.s32.totalorder %s1183_s27, 1 }
  0x17   : > { %p220_p10 = scmp.lt.s32.totalorder %s1183_s27, 3  ;;  %p1290_p11 = por %p207_p7, %p41_p0 }
  0x18   : > { %p1294_p12 = por %p213_p8, %p47_p3  ;;  %s1185_s16 = smov [#allocation8]  }
  0x19   : > { %s1589_s13 = scalar_select %p1290_p11, 1, 0 }
  0x1a   : > { %s1590_s14 = scalar_select %p1294_p12, 1, 0 }
  0x1b   : > { %p1298_p13 = pnand %p805_p9, %p220_p10  ;;  %s232_s17 = sshll.u32 %s1185_s16, 4  ;;  %s233_s17 = int_to_ptr.vmem [resolvable:$true] %s232_s17 }
  0x1c   : > { %1591 = sst [smem:[#allocation19_spill]] %s1590_s14  ;;  %s1313_s19 = sand.u32 1, %s1179_s26  }
  0x1d   : > { %s1592_s15 = scalar_select %p1298_p13, 1, 0 }
  0x1e   : > { %p882_p1 = pneg %p1298_p13  ;;  %s283_s20 = sand.u32 1, %s1183_s27  }
  0x1f   : > { %s1594_s3 = sld [smem:[#allocation21_spill]] }
  0x20   : > { %p1306_p2 = pnand %p882_p1, %p1566_p4 }
  0x22   : > { %s1593_s18 = scalar_select %p1306_p2, 1, 0 }
  0x23   : > { %p1574_p8 = pneg %p1306_p2 }
  0x25   : > { %s963_s23 = scalar_lea.hbm %s1594_s3, 256 }
  0x26   : > { %p964_p7 = scmp.ne.s32.totalorder %s1594_s3, %s963_s23  ;;  %p970_p1 = scmp.lt.u32.totalorder %s963_s23, %s1594_s3 }
  0x28   : > { %p966_p9 = pnand %p1574_p8, %p964_p7 }
  0x2a   : > { %p967_p10 = pneg %p966_p9 }
  0x2c   : > { %p972_p0 = pnand %p970_p1, %p967_p10 }
  0x2e   : > { %975 = shalt.err (!%p972_p0)
}
  0x2f   : > { %s976_s10 = scalar_lea.vmem %s233_s17, 256  ;;  %p984_p11 = scmp.lt.s32.totalorder %s233_s17, %s233_s17 }
  0x30   : > { %p977_p4 = scmp.ne.s32.totalorder %s233_s17, %s976_s10  ;;  %p985_p6 = scmp.lt.s32.totalorder %s976_s10, %s976_s10 }
  0x32   : > { %p979_p3 = pnand %p977_p4, %p1574_p8  ;;  %p986_p13 = por %p985_p6, %p984_p11 }
  0x34   : > { %p980_p12 = pneg %p979_p3 }
  0x36   : > { %p987_p5 = pnand %p986_p13, %p980_p12 }
  0x38   : > { %990 = shalt.err (!%p987_p5)
}
  0x39   : > { %s1573_s21 = smov 64   ;;  %s1187_s22 = smov 4  }
  0x3a   : > { %885 = dma.hbm_to_vmem [thread:$0]  (!%p1306_p2), %s1594_s3, 256, %s233_s17, [#allocation9], %s1573_s21, %s1573_s21, %s1187_s22  }
  0x3b   : > { %p1595_p4 = scmp.ne.s32.totalorder %s1587_s11, 0  ;;  %p1596_p0 = scmp.lt.s32.totalorder %s1183_s27, 2 }
  0x3c   : > { %s811_s8 = sshll.u32 %s1313_s19, 3  ;;  %s838_s9 = sshll.u32 %s1183_s27, 7 }
  0x3d   : > { %p1345_p6 = pnand %p1596_p0, %p1595_p4  ;;  %s1598_s1 = sld [smem:[#allocation20_spill]] }
  0x3e   : > { %s287_s23 = scalar_lea.vmem [#allocation5], %s811_s8  ;;  %s1358_s11 = scalar_lea.sflag [#allocation6], %s283_s20 }
  0x3f   : > { %s1597_s10 = scalar_select %p1345_p6, 1, 0 }
  0x40   : > { %s294_s17 = sshll.u32 %s287_s23, 4  ;;  %p1364_p11 = pneg %p1345_p6  ;;  %s1356_s17 = int_to_ptr.vmem [resolvable:$true] %s294_s17 }
  0x42   : > { %s1599_s21 = scalar_select %p1364_p11, 1, 0 }
  0x43   : > { %s1354_s30 = scalar_lea.hbm %s1598_s1, %s838_s9  ;;  %s996_s8 = scalar_lea.hbm %s1598_s1, 256 }
  0x44   : > { %s991_s29 = scalar_lea.hbm %s1354_s30, 128  ;;  %p997_p3 = scmp.lt.u32.totalorder %s1354_s30, %s1598_s1 }
  0x45   : > { %p992_p5 = scmp.ne.s32.totalorder %s1354_s30, %s991_s29  ;;  %p998_p7 = scmp.lt.u32.totalorder %s996_s8, %s991_s29 }
  0x46   : > { %p1000_p10 = scmp.lt.u32.totalorder %s991_s29, %s1354_s30 }
  0x47   : > { %p994_p12 = pnand %p1364_p11, %p992_p5  ;;  %p999_p9 = por %p998_p7, %p997_p3 }
  0x49   : > { %p995_p13 = pneg %p994_p12  ;;  %p1001_p1 = por %p1000_p10, %p999_p9 }
  0x4b   : > { %p1002_p4 = pnand %p1001_p1, %p995_p13 }
  0x4d   : > { %1005 = shalt.err (!%p1002_p4)
}
  0x4e   : > { %s1006_s20 = scalar_lea.vmem %s1356_s17, 128  ;;  %s1188_s26 = smov [#allocation5]  }
  0x4f   : > { %p1007_p0 = scmp.ne.s32.totalorder %s1356_s17, %s1006_s20  ;;  %s1011_s9 = sshll.u32 %s1188_s26, 4  ;;  %s1012_s9 = int_to_ptr.vmem [resolvable:$false] %s1011_s9 }
  0x50   : > { %s1013_s16 = scalar_lea.vmem %s1012_s9, 256  ;;  %p1014_p8 = scmp.lt.s32.totalorder %s1356_s17, %s1012_s9 }
  0x51   : > { %p1009_p5 = pnand %p1007_p0, %p1364_p11  ;;  %p1015_p2 = scmp.lt.s32.totalorder %s1013_s16, %s1006_s20 }
  0x53   : > { %p1010_p12 = pneg %p1009_p5  ;;  %p1016_p3 = por %p1015_p2, %p1014_p8 }
  0x55   : > { %p1017_p7 = pnand %p1016_p3, %p1010_p12 }
  0x57   : > { %1020 = shalt.err (!%p1017_p7)
}
  0x58   : > { %s1600_s29 = smov 64   ;;  %s1189_s8 = smov [#allocation10]  }
  0x59   : > { %895 = dma.hbm_to_vmem [thread:$0]  (!%p1345_p6), %s1354_s30, 128, %s1356_s17, %s1358_s11, %s1600_s29, %s1600_s29, %s1187_s22  }
  0x5a   : > { %s248_s23 = sshll.u32 %s1189_s8, 4  ;;  %s1021_s20 = scalar_lea.hbm %s1563_s5, 512  ;;  %s249_s23 = int_to_ptr.vmem [resolvable:$true] %s248_s23 }
  0x5b   : > { %p1022_p2 = scmp.ne.s32.totalorder %s1563_s5, %s1021_s20  ;;  %p1601_p8 = scmp.ne.s32.totalorder %s1593_s18, 0 }
  0x5c   : > { %p1028_p1 = scmp.lt.u32.totalorder %s1021_s20, %s1563_s5 }
  0x5d   : > { %p1602_p13 = pneg %p1601_p8 }
  0x5f   : > { %p1024_p9 = pnand %p1022_p2, %p1602_p13 }
  0x61   : > { %p1025_p10 = pneg %p1024_p9 }
  0x63   : > { %p1030_p4 = pnand %p1028_p1, %p1025_p10 }
  0x65   : > { %1033 = shalt.err (!%p1030_p4)
}
  0x66   : > { %s1034_s30 = scalar_lea.vmem %s249_s23, 512  ;;  %p1603_p5 = pmov %p1602_p13 }
  0x67   : > { %p1035_p0 = scmp.ne.s32.totalorder %s249_s23, %s1034_s30  ;;  %p1042_p7 = scmp.lt.s32.totalorder %s249_s23, %s249_s23 }
  0x68   : > { %p1043_p6 = scmp.lt.s32.totalorder %s1034_s30, %s1034_s30 }
  0x69   : > { %p1037_p12 = pnand %p1035_p0, %p1603_p5 }
  0x6a   : > { %p1044_p11 = por %p1043_p6, %p1042_p7 }
  0x6b   : > { %p1038_p3 = pneg %p1037_p12 }
  0x6d   : > { %p1045_p2 = pnand %p1044_p11, %p1038_p3 }
  0x6f   : > { %1048 = shalt.err (!%p1045_p2)
}
  0x70   : > { %s1190_s1 = smov 128   ;;  %s1191_s3 = smov 8  }
  0x71   : > { %888 = dma.hbm_to_vmem [thread:$0]  (!%p1601_p8), %s1563_s5, 512, %s249_s23, [#allocation9], %s1190_s1, %s1190_s1, %s1191_s3  }
  0x72   : > { %s809_s17 = sshll.u32 %s1313_s19, 2  ;;  %s810_s29 = sshll.u32 %s1183_s27, 6 }
  0x73   : > { %s1418_s20 = scalar_lea.hbm %s1558_s0, %s810_s29  ;;  %s269_s9 = scalar_lea.vmem [#allocation2], %s809_s17 }
  0x74   : > { %s276_s16 = sshll.u32 %s269_s9, 4  ;;  %s266_s18 = scalar_lea.sflag [#allocation3], %s1313_s19  ;;  %s277_s16 = int_to_ptr.vmem [resolvable:$true] %s276_s16 }
  0x75   : > { %s1049_s30 = scalar_lea.hbm %s1418_s20, 64  ;;  %p1604_p11 = scmp.ne.s32.totalorder %s1599_s21, 0 }
  0x76   : > { %p1050_p6 = scmp.ne.s32.totalorder %s1418_s20, %s1049_s30  ;;  %s1054_s3 = scalar_lea.hbm %s1558_s0, 128 }
  0x77   : > { %p1055_p9 = scmp.lt.u32.totalorder %s1418_s20, %s1558_s0  ;;  %p1056_p10 = scmp.lt.u32.totalorder %s1054_s3, %s1049_s30 }
  0x78   : > { %p1052_p8 = pnand %p1050_p6, %p1604_p11  ;;  %p1058_p4 = scmp.lt.u32.totalorder %s1049_s30, %s1418_s20 }
  0x79   : > { %p1057_p1 = por %p1056_p10, %p1055_p9 }
  0x7a   : > { %p1053_p13 = pneg %p1052_p8 }
  0x7b   : > { %p1059_p0 = por %p1058_p4, %p1057_p1 }
  0x7d   : > { %p1060_p5 = pnand %p1059_p0, %p1053_p13 }
  0x7f   : > { %1063 = shalt.err (!%p1060_p5)
}
  0x80   : > { %s1064_s8 = scalar_lea.vmem %s277_s16, 64  ;;  %s1192_s26 = smov [#allocation2]  }
  0x81   : > { %p1065_p12 = scmp.ne.s32.totalorder %s277_s16, %s1064_s8  ;;  %s1069_s9 = sshll.u32 %s1192_s26, 4  ;;  %s1070_s9 = int_to_ptr.vmem [resolvable:$false] %s1069_s9 }
  0x82   : > { %s1071_s23 = scalar_lea.vmem %s1070_s9, 128  ;;  %p1072_p2 = scmp.lt.s32.totalorder %s277_s16, %s1070_s9 }
  0x83   : > { %p1067_p3 = pnand %p1065_p12, %p1604_p11  ;;  %p1073_p6 = scmp.lt.s32.totalorder %s1071_s23, %s1064_s8 }
  0x85   : > { %p1068_p7 = pneg %p1067_p3  ;;  %p1074_p8 = por %p1073_p6, %p1072_p2 }
  0x87   : > { %p1075_p9 = pnand %p1074_p8, %p1068_p7 }
  0x89   : > { %1078 = shalt.err (!%p1075_p9)
}
  0x8a   : > { %p1605_p10 = scmp.ne.s32.totalorder %s1597_s10, 0  ;;  %s1445_s3 = scalar_lea.hbm %s1560_s2, %s810_s29 }
  0x8b   : > { %s308_s14 = scalar_lea.vmem [#allocation7], %s809_s17  ;;  %s1079_s8 = scalar_lea.hbm %s1445_s3, 64 }
  0x8c   : > { %892 = dma.hbm_to_vmem [thread:$0]  (!%p1605_p10), %s1418_s20, 64, %s277_s16, %s266_s18  }
  0x8d   : > { %s315_s22 = sshll.u32 %s308_s14, 4  ;;  %p1080_p13 = scmp.ne.s32.totalorder %s1445_s3, %s1079_s8  ;;  %s316_s22 = int_to_ptr.vmem [resolvable:$true] %s315_s22 }
  0x8e   : > { %s1084_s18 = scalar_lea.hbm %s1560_s2, 128  ;;  %p1085_p0 = scmp.lt.u32.totalorder %s1445_s3, %s1560_s2 }
  0x8f   : > { %p1082_p1 = pnand %p1080_p13, %p1604_p11  ;;  %p1086_p5 = scmp.lt.u32.totalorder %s1084_s18, %s1079_s8 }
  0x90   : > { %p1088_p3 = scmp.lt.u32.totalorder %s1079_s8, %s1445_s3 }
  0x91   : > { %p1083_p4 = pneg %p1082_p1  ;;  %p1087_p12 = por %p1086_p5, %p1085_p0 }
  0x93   : > { %p1089_p7 = por %p1088_p3, %p1087_p12 }
  0x95   : > { %p1090_p2 = pnand %p1089_p7, %p1083_p4 }
  0x97   : > { %1093 = shalt.err (!%p1090_p2)
}
  0x98   : > { %s1094_s19 = scalar_lea.vmem %s316_s22, 64  ;;  %s1193_s17 = smov [#allocation7]  }
  0x99   : > { %p1095_p6 = scmp.ne.s32.totalorder %s316_s22, %s1094_s19  ;;  %s1099_s9 = sshll.u32 %s1193_s17, 4  ;;  %s1100_s9 = int_to_ptr.vmem [resolvable:$false] %s1099_s9 }
  0x9a   : > { %s1101_s23 = scalar_lea.vmem %s1100_s9, 128  ;;  %p1102_p13 = scmp.lt.s32.totalorder %s316_s22, %s1100_s9 }
  0x9b   : > { %p1097_p8 = pnand %p1095_p6, %p1604_p11  ;;  %p1103_p1 = scmp.lt.s32.totalorder %s1101_s23, %s1094_s19 }
  0x9d   : > { %p1098_p9 = pneg %p1097_p8  ;;  %p1104_p10 = por %p1103_p1, %p1102_p13 }
  0x9f   : > { %p1105_p0 = pnand %p1104_p10, %p1098_p9 }
  0xa1   : > { %1108 = shalt.err (!%p1105_p0)
}
  0xa2   : > { %p1606_p5 = scmp.ne.s32.totalorder %s1597_s10, 0  ;;  %p1607_p4 = scmp.ne.s32.totalorder %s1592_s15, 0 }
  0xa3   : > { %s1470_s21 = sand.u32 (!%p1607_p4), 1, %s1175_s25   ;;  %p1608_p11 = scmp.ne.s32.totalorder (!%p1607_p4), %s1588_s12, 0 }
  0xa4   : > { %898 = dma.hbm_to_vmem [thread:$0]  (!%p1606_p5), %s1445_s3, 64, %s316_s22, %s1358_s11  }
  0xa5   : > { %324 = sbr.rel (%p1607_p4) target bundleno = 1171 (0x493), region = 48  ;;  %s817_s30 = sshll.u32 (!%p1607_p4), %s1470_s21, 2 }
  0xa6   : > { %s327_s1 = scalar_lea.sflag (!%p1607_p4), [#allocation3], %s1470_s21  ;;  %s1474_s14 = scalar_lea.vmem (!%p1607_p4), [#allocation2], %s817_s30 }
  0xac   : > { %1154 = dma.done.wait (%p1608_p11), %s327_s1, 64  }
  0xad   : > { %1156 = vsyncadd (%p1608_p11), %s327_s1, 4294967232  ;;  %s335_s15 = sand.u32 1, %s1259_s28   ;;  %s818_s10 = sshll.u32 %s1470_s21, 3 }
  0xae   : > { %s336_s11 = scalar_lea.sflag [#allocation6], %s335_s15  ;;  %s339_s3 = scalar_lea.vmem [#allocation5], %s818_s10 }
  0xaf   : > { %1158 = dma.done.wait (%p1608_p11), %s336_s11, 192  }
  0xb0   : > { %1160 = vsyncadd (%p1608_p11), %s336_s11, 4294967104  ;;  %s1488_s22 = scalar_lea.vmem [#allocation7], %s817_s30  ;;  %p1609_p10 = scmp.eq.s32.totalorder %s1259_s28, 0 }
  0xb2   : > { %1162 = dma.done.wait (%p1609_p10), [#allocation9], 768   ;;  %p1610_p12 = pmov %p1609_p10 }
  0xb3   : > { %v1194_v0 = vmov 0.0   ;;  %v1195_v1 = vmov 0   ;;  %vm1196_vm0 = vmmov 0   ;;  %v950_v2 = vld [vmem:[#allocation10 + $0x4] ss:$8 sps:$4 sm:$0xff]   ;;  %v956_v6 = vld [vmem:[#allocation8] sm:$0xff]   ;;  %v474_v10 = vlaneseq }
  0xb4   : > { %1164 = vsyncadd (%p1610_p12), [#allocation9], 4294966528  ;;  %846 = vmatprep.subr.bf16.mxu0 %v1194_v0  ;;  %544 = vmatprep.mubr.bf16.mxu1 %v1195_v1  ;;  %v952_v3 = vld [vmem:[#allocation10] ss:$8 sps:$4 sm:$0xff]   ;;  %v953_v4 = vld [vmem:[#allocation10 + $0x14] ss:$8 sps:$4 sm:$0xff]  }
  0xb5   : > { %850 = vmatprep.mubr.msk.bf16.mxu0 %vm1196_vm0, %v1194_v0  ;;  %512 = vmatprep.subr.bf16.mxu1 %v950_v2  ;;  %v955_v5 = vld [vmem:[#allocation10 + $0x10] ss:$8 sps:$4 sm:$0xff]   ;;  %vm424_vm1 = vcmask 261120   ;;  %v475_v11 = vshrl.u32 %v474_v10, 7  ;;  %v558_v35 = vld [vmem:[%s1488_s22] sm:$0xf] }
  0xb6   : > { %513 = vmatpush1.bf16.msra.mxu1 %v952_v3  ;;  %847 = vmatpush3.bf16.msra.mxu0 %v956_v6  ;;  %v958_v7 = vld [vmem:[#allocation8 + $0x8] sm:$0xff]   ;;  %v398_v9 = vld [vmem:[%s1474_s14] sm:$0xf]  ;;  %v559_v36 = vunpack.c.l.bf16 %v558_v35  ;;  %vm600_vm2 = vcmask 130048   ;;  %s396_s18 = scalar_lea.vmem [#allocation11], %s818_s10  ;;  %s835_s29 = sshll.u32 %s1259_s28, 7 }
  0xb7   : > { %514 = vmatprep.subr.bf16.mxu1 %v953_v4  ;;  %v957_v8 = vld [vmem:[%s339_s3] sm:$0xff]   ;;  %848 = vmatprep.subr.bf16.mxu0 %v1194_v0  ;;  %v476_v12 = vsub.s32 0, %v475_v11  ;;  %v472_v13 = vld [vmem:[%s1564_s6] sm:$0x3]  ;;  %v480_v14 = vsub.s32 1, %v475_v11  ;;  %s672_s26 = sshll.u32 %s396_s18, 4  ;;  %s1516_s9 = scalar_lea.hbm %s1565_s7, %s835_s29  ;;  %s1511_s26 = int_to_ptr.vmem [resolvable:$true] %s672_s26 }
  0xb8   : > { %v823_v18 = vld [vmem:[%s1562_s4] ss:$0 sm:$0xff]  ;;  %s659_s23 = scalar_lea.sflag [#allocation4], %s1470_s21  ;;  %s1109_s30 = scalar_lea.vmem %s1511_s26, 128 }
  0xb9   : > { %v477_v15 = vrot.slane %v472_v13, %v476_v12  ;;  %v481_v17 = vrot.slane %v472_v13, %v480_v14  ;;  %p1110_p3 = scmp.ne.s32.totalorder %s1511_s26, %s1109_s30  ;;  %p1611_p7 = scmp.ne.s32.totalorder %s1589_s13, 0 }
  0xba   : > { %515 = vmatpush1.bf16.msra.mxu1 %v955_v5  ;;  %849 = vmatpush3.bf16.msra.mxu0 %v958_v7  ;;  %s1197_s28 = smov [#allocation11]  }
  0xbb   : > { %860 = vmatprep.subr.bf16.mxu1 %v1194_v0  ;;  %854 = vmatprep.subr.bf16.mxu0 %v1194_v0  ;;  %p1111_p2 = pnand %p1110_p3, %p1611_p7  ;;  %s1113_s1 = sshll.u32 %s1197_s28, 4  ;;  %s1114_s1 = int_to_ptr.vmem [resolvable:$false] %s1113_s1 }
  0xbc   : > { %s1115_s14 = scalar_lea.vmem %s1114_s1, 256  ;;  %p1116_p8 = scmp.lt.s32.totalorder %s1511_s26, %s1114_s1 }
  0xbd   : > { %832 = vmatmul.mubr.msk.bf16.vlgmr.msra.gmra.mrb[0].mxu1 %vm424_vm1, %v957_v8  ;;  %851 = vmatmul.mubr.msk.bf16.vlgmr.msra.gmra.mrb[0].mxu0 %vm424_vm1, %v398_v9  ;;  %p1112_p6 = pneg %p1111_p2  ;;  %p1117_p9 = scmp.lt.s32.totalorder %s1115_s14, %s1109_s30 }
  0xbe   : > { %862 = vmatprep.mubr.msk.bf16.mxu1 %vm1196_vm0, %v1194_v0  ;;  %856 = vmatprep.mubr.msk.bf16.mxu0 %vm1196_vm0, %v1194_v0 }
  0xbf   : > { %p1118_p13 = por %p1117_p9, %p1116_p8 }
  0xc1   : > { %p1119_p1 = pnand %p1118_p13, %p1112_p6 }
 0x190   : > { %v546_v16 = vpop.f32.mrb[0].mxu1  ;;  %v462_v21 = vpop.f32.mrb[0].mxu0 }
 0x191   : > { %v548_v19 = vpop.f32.mrb[1].mxu1  ;;  %v547_v22 = vadd.f32 %v546_v16, %v477_v15  ;;  %v463_v25 = vadd.f32 %v823_v18, %v462_v21  ;;  %v852_v26 = vpop.f32.mrb[1].mxu0 }
 0x192   : > { %v550_v20 = vpop.f32.mrb[2].mxu1  ;;  %v549_v27 = vadd.f32 %v548_v19, %v481_v17  ;;  %v465_v29 = vpop.f32.mrb[2].mxu0 }
 0x193   : > { %v551_v23 = vadd.f32 %v550_v20, %v477_v15  ;;  %v552_v24 = vpop.f32.mrb[3].mxu1  ;;  %v853_v31 = vpop.f32.mrb[3].mxu0  ;;  %v555_v33 = vmul.f32 0.125, %v463_v25 }
 0x194   : > { %v553_v28 = vadd.f32 %v552_v24, %v481_v17 }
 0x195   : > { %v557_v30 = vpack.c.bf16 %v551_v23, %v547_v22  ;;  %v556_v34 = vpack.c.bf16 %v555_v33, %v555_v33 }
 0x196   : > { %v613_v32 = vpack.c.bf16 %v553_v28, %v549_v27 }
 0x197   : > { %855 = vmatpush3.bf16.xpose.msra.mxu0 %v557_v30 }
 0x198   : > { %861 = vmatpush3.bf16.msra.mxu1 %v613_v32 }
 0x19e   : > { %857 = vmatmul.mubr.bf16.vlgmr.msra.gmra.mrb[4].mxu0 %v556_v34 }
 0x271   : > { %v594_v37 = vpop.f32.mrb[4].mxu0 }
 0x272   : > { %v595_v38 = vadd.f32 %v594_v37, %v559_v36  ;;  %v858_v39 = vpop.f32.mrb[5].mxu0 }
 0x273   : > { %v597_v40 = vpop.f32.mrb[6].mxu0 }
 0x274   : > { %v859_v41 = vpop.f32.mrb[7].mxu0  ;;  %v601_v42 = vsel %vm600_vm2, %v595_v38, -inf }
 0x275   : > { %602 = vmax.xlane.f32.xlu0 %v601_v42 }
 0x302   : > { %v603_v43 = vpop.xlane.xlu0 %602 }
 0x303   : > { %v604_v44 = vsub.f32 %v595_v38, %v603_v43 }
 0x305   : > { %v605_v45 = vmul.f32 1.442695, %v604_v44 }
 0x307   : > { %959 = vpow2.f32 %v605_v45 }
 0x311   : > { %v960_v46 = vpop.eup %959 }
 0x312   : > { %v607_v47 = vsel %vm600_vm2, %v960_v46, 0.0 }
 0x313   : > { %608 = vadd.xlane.f32.xlu0 %v607_v47 }
 0x3a0   : > { %v609_v48 = vpop.xlane.xlu0 %608 }
 0x3a1   : > { %961 = vrcp.f32 %v609_v48 }
 0x3ab   : > { %v962_v49 = vpop.eup %961 }
 0x3ac   : > { %v611_v50 = vmul.f32 %v962_v49, %v960_v46 }
 0x3ae   : > { %v612_v51 = vpack.c.bf16 %v611_v50, %v611_v50 }
 0x3b0   : > { %863 = vmatmul.mubr.msk.bf16.vlgmr.msra.gmra.mrb[4].mxu1 %vm600_vm2, %v612_v51 }
 0x483   : > { %v651_v52 = vpop.f32.mrb[4].mxu1 }
 0x484   : > { %657 = vst [vmem:[%s396_s18] sm:$0xff] %v651_v52  ;;  %v864_v53 = vpop.f32.mrb[5].mxu1 }
 0x485   : > { %v654_v54 = vpop.f32.mrb[6].mxu1 }
 0x486   : > { %1122 = shalt.err (!%p1119_p1)
}
 0x487   : > { %s1123_s21 = scalar_lea.hbm %s1516_s9, 128  ;;  %s1127_s11 = scalar_lea.hbm %s1565_s7, 256 }
 0x488   : > { %p1124_p0 = scmp.ne.s32.totalorder %s1516_s9, %s1123_s21  ;;  %p1128_p11 = scmp.lt.u32.totalorder %s1516_s9, %s1565_s7 }
 0x489   : > { %p1129_p10 = scmp.lt.u32.totalorder %s1127_s11, %s1123_s21  ;;  %p1131_p3 = scmp.lt.u32.totalorder %s1123_s21, %s1516_s9 }
 0x48a   : > { %p1125_p5 = pnand %p1124_p0, %p1611_p7 }
 0x48b   : > { %p1130_p12 = por %p1129_p10, %p1128_p11 }
 0x48c   : > { %p1126_p4 = pneg %p1125_p5 }
 0x48d   : > { %p1132_p2 = por %p1131_p3, %p1130_p12 }
 0x48f   : > { %p1133_p6 = pnand %p1132_p2, %p1126_p4 }
 0x491   : > { %1136 = shalt.err (!%p1133_p6)
}
 0x492   : > { %880 = dma.vmem_to_hbm [thread:$0]  (%p1611_p7), %s1511_s26, 128, %s1516_s9, %s659_s23   ;;  %v865_v55 = vpop.f32.mrb[7].mxu1 }
 0x493 PF: > { %s1612_s12 = sld [smem:[#allocation19_spill]]  ;;  %s684_s8 = sand.u32 1, %s1171_s24  }
 0x494   : > { %p1614_p9 = scmp.ge.s32.totalorder %s1183_s27, 2  ;;  %s685_s20 = scalar_lea.sflag [#allocation4], %s684_s8 }
 0x499   : > { %p1613_p8 = scmp.ne.s32.totalorder %s1612_s12, 0 }
 0x49b   : > { %p900_p13 = pnand %p1614_p9, %p1613_p8 }
 0x49d   : > { %1166 = dma.done.wait (!%p900_p13), %s685_s20, 128  }
 0x49e   : > { %1168 = vsyncadd (!%p900_p13), %s685_s20, 4294967168  ;;  %s1615_s27 = sld [smem:[#allocation17_spill]]  ;;  %s1616_s16 = sld [smem:[#allocation16_spill]] }
 0x49f   : > { %s1617_s26 = sld [smem:[#allocation18_spill]]  ;;  %s1618_s24 = smov %s1175_s25 }
 0x4a4   : > { %p24_p1 = scmp.ge.s32.totalorder %s1615_s27, 4   ;;  %s1619_s25 = smov %s1616_s16 }
 0x4a6   :  { %26 = sbr.rel (!%p24_p1) target bundleno = 11 (0xb), region = 125 }
 0x4ad   :  { %690 = vsyncpa [#allocation3], 1 }
 0x4ae   :  { %692 = vsyncpa [#allocation3 + $0x1], 1 }
 0x4af   :  { %693 = vsyncpa [#allocation6], 1 }
 0x4b0   :  { %695 = vsyncpa [#allocation6 + $0x1], 1 }
 0x4b1   :  { %696 = vsyncpa [#allocation9], 1 }
 0x4b2   :  { %697 = vsyncpa [#allocation4], 1 }
 0x4b3   :  { %699 = vsyncpa [#allocation4 + $0x1], 1 }

</bundles_post_ra>
